<compile_context>
chip_gen: v6e
topology: v6e:2x2x1
jax: 0.10.0
libtpu: 0.0.40
codegen_flags: <defaults>
</compile_context>

<pallas_src>
import functools

import jax
import jax.numpy as jnp
from jax.experimental import pallas as pl
from jax.experimental.pallas import tpu as pltpu

# Model hyper-parameters (mirroring the PyTorch module)
EMB = 2                 # embedding_size
FILTER_SIZES = [2, 2, 2]
NCONV = len(FILTER_SIZES)
NF = 3                  # num_filters
NCLS = 2                # num_classes
VOCAB = 16              # synthetic vocab size
B, S = 2, 8             # batch, sequence length


def _align8(x):
    return ((x + 7) // 8) * 8


def textcnn_kernel(tok_ref, slab_ref, out_ref, *,
                   seq_len, vocab, nflt, ncls, bias_off, wo_off, bo_off):
    # tok_ref : (B*S, 2) int32  col 0 = token at row r, col 1 = token at row r+1
    # slab_ref: (64, 128) f32   packed constants:
    #             rows [0, 2*VOCAB)      cols [0, NFLT): emb-folded filter bank W2
    #             row  bias_off          cols [0, NFLT): conv bias
    #             rows [wo_off, +NFLT)   cols [0, NCLS): linear weight
    #             row  bo_off            cols [0, NCLS): linear bias
    # out_ref : (B, NCLS) f32   logits
    n_rows = tok_ref.shape[0]
    batch = n_rows // seq_len

    tok = tok_ref[...]                                   # (B*S, 2)
    tok_cur = tok[:, 0:1]                                # token at window start
    tok_next = tok[:, 1:2]                               # token at next position

    # Combined one-hot over a doubled vocab axis: lanes [0, V) match the current
    # token, lanes [V, 2V) match the next token.  A single MXU dot against the
    # embedding-folded filter bank then computes embedding lookup + the full
    # 2-tap conv for all NCONV*NF filters at once.
    lane = jax.lax.broadcasted_iota(jnp.int32, (n_rows, 2 * vocab), 1)
    sel = jnp.where(lane < vocab, tok_cur, tok_next + vocab)
    onehot2 = (lane == sel).astype(jnp.float32)          # (B*S, 2*VOCAB)

    w2 = slab_ref[0:2 * vocab, 0:nflt]                   # (2*VOCAB, NFLT)
    conv = jnp.dot(onehot2, w2,
                   preferred_element_type=jnp.float32)   # (B*S, NFLT)

    # Conv bias + end-of-sequence window gate: a window starting at the last
    # position of a sequence is invalid; -1e30 before ReLU pins it to 0, which
    # can never beat the non-negative max over the valid windows.
    bias = slab_ref[bias_off:bias_off + 1, 0:nflt]       # (1, NFLT)
    row = jax.lax.broadcasted_iota(jnp.int32, (n_rows, 1), 0)
    gate = jnp.where(row % seq_len == seq_len - 1, -1e30, 0.0)
    conv = jnp.maximum(conv + bias + gate, 0.0)

    # Max-pool over sequence positions: (B*S, NFLT) -> (B, S, NFLT) is a free
    # layout reinterpretation (S == sublane tile), then one sublane reduce.
    pooled = jnp.max(conv.reshape(batch, seq_len, nflt), axis=1)   # (B, NFLT)

    # Linear head.
    wo = slab_ref[wo_off:wo_off + nflt, 0:ncls]          # (NFLT, NCLS)
    bo = slab_ref[bo_off:bo_off + 1, 0:ncls]             # (1, NCLS)
    out_ref[...] = (jnp.dot(pooled, wo,
                            preferred_element_type=jnp.float32) + bo)


@jax.jit
def textcnn_forward(x_tokens, emb_table, conv_w, conv_b, out_w, out_b):
    """x_tokens: (B, S) int32; returns logits (B, NCLS)."""
    b, s = x_tokens.shape
    vocab, emb = emb_table.shape
    nconv, nf, kh, kw = conv_w.shape
    nflt = nconv * nf
    ncls = out_w.shape[1]
    # The PyTorch spec fixes kernel_size=(embedding_size, filter_size) = (2, EMB):
    # kH(=2) slides over the sequence, kW(=EMB) covers the whole embedding dim
    # (conv output width 1).  The fused im2col below hard-codes that case.
    assert kh == 2 and kw == emb, "kernel assumes kH=2, kW=EMB as in the PyTorch module"

    # Token ids: col 0 = id at flattened row r, col 1 = id at row r+1 (the wrapped
    # last row of each sequence is killed by the in-kernel window gate).
    tok_flat = x_tokens.reshape(b * s).astype(jnp.int32)
    tok2 = jnp.stack([tok_flat, jnp.roll(tok_flat, -1)], axis=1)       # (B*S, 2)

    # Pre-fold the embedding table into the conv filter bank:
    #   conv[r, f] = sum_{dh,dw} w[f, dh, dw] * e[tok[r+dh], dw]
    #              = A[tok[r], f] + Bm[tok[r+1], f]
    # with A = emb @ W_top (dh=0 taps) and Bm = emb @ W_bot (dh=1 taps).
    w_flat = conv_w.reshape(nflt, kh, kw).astype(jnp.float32)          # (NFLT, 2, EMB)
    emb_f32 = emb_table.astype(jnp.float32)
    a_fold = emb_f32 @ w_flat[:, 0, :].T                               # (VOCAB, NFLT)
    b_fold = emb_f32 @ w_flat[:, 1, :].T                               # (VOCAB, NFLT)
    w2 = jnp.concatenate([a_fold, b_fold], axis=0)                     # (2*VOCAB, NFLT)

    # Pack every constant operand into one zero-padded, lane-dense f32 slab with
    # 8-row-aligned region starts (static in-kernel slices stay tile-aligned).
    bias_off = _align8(2 * vocab)
    wo_off = _align8(bias_off + 1)
    bo_off = _align8(wo_off + nflt)
    slab_rows = _align8(bo_off + 1)
    slab = jnp.zeros((slab_rows, 128), jnp.float32)
    slab = slab.at[0:2 * vocab, 0:nflt].set(w2)
    slab = slab.at[bias_off, 0:nflt].set(conv_b.reshape(nflt).astype(jnp.float32))
    slab = slab.at[wo_off:wo_off + nflt, 0:ncls].set(out_w.astype(jnp.float32))
    slab = slab.at[bo_off, 0:ncls].set(out_b.astype(jnp.float32))

    kernel = functools.partial(
        textcnn_kernel, seq_len=s, vocab=vocab, nflt=nflt, ncls=ncls,
        bias_off=bias_off, wo_off=wo_off, bo_off=bo_off)
    return pl.pallas_call(
        kernel,
        out_shape=jax.ShapeDtypeStruct((b, ncls), jnp.float32),
        in_specs=[
            pl.BlockSpec(memory_space=pltpu.MemorySpace.VMEM),   # token ids
            pl.BlockSpec(memory_space=pltpu.MemorySpace.VMEM),   # constant slab
        ],
        out_specs=pl.BlockSpec(memory_space=pltpu.MemorySpace.VMEM),
    )(tok2, slab)


def ref_forward(x_tokens, emb_table, conv_w, conv_b, out_w, out_b):
    """Pure-JAX reference matching the PyTorch forward pass."""
    e = emb_table[x_tokens]                                            # (B, S, EMB)
    patches = jnp.stack([e[:, :-1, :], e[:, 1:, :]], axis=2)           # (B, S-1, kH=2, kW=EMB)
    feats = []
    for c in range(conv_w.shape[0]):
        conv = jnp.einsum("fhw,bihw->bfi", conv_w[c], patches)         # (B, NF, S-1)
        conv = conv + conv_b[c][None, :, None]
        conv = jnp.maximum(conv, 0.0)
        feats.append(jnp.max(conv, axis=-1))                           # (B, NF)
    flat = jnp.concatenate(feats, axis=-1)                             # (B, NCONV*NF)
    return flat @ out_w + out_b


if __name__ == "__main__":
    key = jax.random.PRNGKey(0)
    ks = jax.random.split(key, 6)

    x = jax.random.randint(ks[0], (B, S), 0, VOCAB, dtype=jnp.int32)
    emb_table = jax.random.normal(ks[1], (VOCAB, EMB), jnp.float32)
    # conv weight per PyTorch: (out=NF, in=1, kH=embedding_size, kW=filter_size);
    # in-channel (=1) squeezed, stacked over the NCONV conv branches.
    conv_w = 0.5 * jax.random.normal(ks[2], (NCONV, NF, EMB, FILTER_SIZES[0]), jnp.float32)
    conv_b = 0.1 * jax.random.normal(ks[3], (NCONV, NF), jnp.float32)
    # torch Linear stores (NCLS, flat); we keep the transposed (flat, NCLS) form.
    out_w = 0.5 * jax.random.normal(ks[4], (NCONV * NF, NCLS), jnp.float32)
    out_b = 0.1 * jax.random.normal(ks[5], (NCLS,), jnp.float32)

    logits = jax.block_until_ready(
        textcnn_forward(x, emb_table, conv_w, conv_b, out_w, out_b))
    ref = ref_forward(x, emb_table, conv_w, conv_b, out_w, out_b)

    assert logits.shape == (B, NCLS)
    # MXU f32 dots round operands through bf16 passes; tolerance stays loose enough
    # for that yet tight enough to catch structural (ordering / masking / windowing)
    # bugs, which would show up as O(1) errors.
    assert jnp.allclose(logits, ref, atol=5e-2, rtol=5e-2), (logits, ref)

    print("KERNEL_OK")
</pallas_src>

<mosaic_0001>
module attributes {stable_mosaic.version = 11 : i64} {
  func.func @textcnn_kernel(%arg0: memref<16x2xi32, #tpu.memory_space<vmem>>, %arg1: memref<64x128xf32, #tpu.memory_space<vmem>>, %arg2: memref<2x2xf32, #tpu.memory_space<vmem>>) attributes {dimension_semantics = [], scalar_prefetch = 0 : i64, scratch_operands = 0 : i64, tpu.core_type = #tpu.core_type<tc>} {
    %c0 = arith.constant 0 : index
    %c0_0 = arith.constant 0 : index
    %0 = vector.load %arg0[%c0, %c0_0] : memref<16x2xi32, #tpu.memory_space<vmem>>, vector<16x2xi32>
    %1 = vector.extract_strided_slice %0 {offsets = [0, 0], sizes = [16, 1], strides = [1, 1]} : vector<16x2xi32> to vector<16x1xi32>
    %2 = vector.extract_strided_slice %0 {offsets = [0, 1], sizes = [16, 1], strides = [1, 1]} : vector<16x2xi32> to vector<16x1xi32>
    %3 = tpu.iota {dimensions = array<i32: 1>} : vector<16x32xi32>
    %c16_i32 = arith.constant 16 : i32
    %4 = vector.broadcast %c16_i32 : i32 to vector<16x32xi32>
    %5 = arith.cmpi slt, %3, %4 : vector<16x32xi32>
    %c16_i32_1 = arith.constant 16 : i32
    %6 = vector.broadcast %c16_i32_1 : i32 to vector<16x1xi32>
    %7 = arith.addi %2, %6 : vector<16x1xi32>
    %8 = vector.shape_cast %1 : vector<16x1xi32> to vector<16x1xi32>
    %9 = vector.broadcast %8 : vector<16x1xi32> to vector<16x32xi32>
    %10 = vector.shape_cast %7 : vector<16x1xi32> to vector<16x1xi32>
    %11 = vector.broadcast %10 : vector<16x1xi32> to vector<16x32xi32>
    %12 = arith.select %5, %9, %11 : vector<16x32xi1>, vector<16x32xi32>
    %13 = arith.cmpi eq, %3, %12 : vector<16x32xi32>
    %14 = arith.extui %13 : vector<16x32xi1> to vector<16x32xi32>
    %15 = arith.sitofp %14 : vector<16x32xi32> to vector<16x32xf32>
    %c0_2 = arith.constant 0 : index
    %c0_3 = arith.constant 0 : index
    %16 = vector.load %arg1[%c0_2, %c0_3] : memref<64x128xf32, #tpu.memory_space<vmem>>, vector<32x9xf32>
    %cst = arith.constant dense<0.000000e+00> : vector<16x9xf32>
    %17 = tpu.matmul %15, %16, %cst {dimension_numbers = #tpu.dot_dimension_numbers<[1], [0], [0], [1], [0, 0, 1, 1], [], []>} : vector<16x32xf32>, vector<32x9xf32>, vector<16x9xf32> -> vector<16x9xf32>
    %c32 = arith.constant 32 : index
    %c0_4 = arith.constant 0 : index
    %18 = vector.load %arg1[%c32, %c0_4] : memref<64x128xf32, #tpu.memory_space<vmem>>, vector<1x9xf32>
    %19 = tpu.iota {dimensions = array<i32: 0>} : vector<16x1xi32>
    %c8_i32 = arith.constant 8 : i32
    %c0_i32 = arith.constant 0 : i32
    %20 = arith.cmpi eq, %c8_i32, %c0_i32 : i32
    %c1_i32 = arith.constant 1 : i32
    %21 = arith.select %20, %c1_i32, %c8_i32 : i32
    %22 = vector.broadcast %21 : i32 to vector<16x1xi32>
    %23 = arith.remsi %19, %22 : vector<16x1xi32>
    %c0_i32_5 = arith.constant 0 : i32
    %24 = vector.broadcast %c0_i32_5 : i32 to vector<16x1xi32>
    %25 = arith.cmpi ne, %23, %24 : vector<16x1xi32>
    %c0_i32_6 = arith.constant 0 : i32
    %26 = vector.broadcast %c0_i32_6 : i32 to vector<16x1xi32>
    %27 = arith.cmpi slt, %23, %26 : vector<16x1xi32>
    %c0_i32_7 = arith.constant 0 : i32
    %28 = arith.cmpi slt, %21, %c0_i32_7 : i32
    %29 = vector.broadcast %28 : i1 to vector<16x1xi1>
    %30 = vector.broadcast %29 : vector<16x1xi1> to vector<16x1xi1>
    %31 = arith.xori %27, %30 : vector<16x1xi1>
    %32 = arith.andi %31, %25 : vector<16x1xi1>
    %33 = vector.broadcast %21 : i32 to vector<16x1xi32>
    %34 = arith.addi %23, %33 : vector<16x1xi32>
    %35 = arith.select %32, %34, %23 : vector<16x1xi1>, vector<16x1xi32>
    %c7_i32 = arith.constant 7 : i32
    %36 = vector.broadcast %c7_i32 : i32 to vector<16x1xi32>
    %37 = arith.cmpi eq, %35, %36 : vector<16x1xi32>
    %cst_8 = arith.constant -1.000000e+30 : f32
    %cst_9 = arith.constant 0.000000e+00 : f32
    %38 = vector.broadcast %cst_8 : f32 to vector<16x1xf32>
    %39 = vector.broadcast %cst_9 : f32 to vector<16x1xf32>
    %40 = arith.select %37, %38, %39 : vector<16x1xi1>, vector<16x1xf32>
    %41 = vector.broadcast %18 : vector<1x9xf32> to vector<16x9xf32>
    %42 = arith.addf %17, %41 : vector<16x9xf32>
    %43 = vector.broadcast %40 : vector<16x1xf32> to vector<16x9xf32>
    %44 = arith.addf %42, %43 : vector<16x9xf32>
    %cst_10 = arith.constant 0.000000e+00 : f32
    %45 = vector.broadcast %cst_10 : f32 to vector<16x9xf32>
    %46 = arith.maximumf %44, %45 : vector<16x9xf32>
    %47 = vector.shape_cast %46 : vector<16x9xf32> to vector<2x8x9xf32>
    %cst_11 = arith.constant dense<0xFF800000> : vector<2x9xf32>
    %48 = vector.multi_reduction <maximumf>, %47, %cst_11 [1] : vector<2x8x9xf32> to vector<2x9xf32>
    %c40 = arith.constant 40 : index
    %c0_12 = arith.constant 0 : index
    %49 = vector.load %arg1[%c40, %c0_12] : memref<64x128xf32, #tpu.memory_space<vmem>>, vector<9x2xf32>
    %c56 = arith.constant 56 : index
    %c0_13 = arith.constant 0 : index
    %50 = vector.load %arg1[%c56, %c0_13] : memref<64x128xf32, #tpu.memory_space<vmem>>, vector<1x2xf32>
    %cst_14 = arith.constant dense<0.000000e+00> : vector<2x2xf32>
    %51 = tpu.matmul %48, %49, %cst_14 {dimension_numbers = #tpu.dot_dimension_numbers<[1], [0], [0], [1], [0, 0, 1, 1], [], []>} : vector<2x9xf32>, vector<9x2xf32>, vector<2x2xf32> -> vector<2x2xf32>
    %52 = vector.broadcast %50 : vector<1x2xf32> to vector<2x2xf32>
    %53 = arith.addf %51, %52 : vector<2x2xf32>
    %c0_15 = arith.constant 0 : index
    %c0_16 = arith.constant 0 : index
    %54 = vector.load %arg2[%c0_15, %c0_16] : memref<2x2xf32, #tpu.memory_space<vmem>>, vector<2x2xf32>
    tpu.vector_store %arg2[%c0_15, %c0_16], %53 {strides = array<i32>} : memref<2x2xf32, #tpu.memory_space<vmem>>, vector<2x2xf32>,
    return
  }
}

</mosaic_0001>

<bundles_post_ra>
// kernel: textcnn_forward.1
= control target key start
LH: loop header
LB: loop body
LE: loop exit
PB: predicated region body
PF: predicated region fallthrough
CT: control target
= control target key end

     0   :  { %v349_v3 = vmov 0   ;;  %s405_s0 = inlined_call_operand.vmem [shape: s32[16,2], index: 0, kind: input, shape index: {}]   ;;  %s406_s1 = inlined_call_operand.vmem [shape: f32[64,128], index: 1, kind: input, shape index: {}]   ;;  %s407_s2 = inlined_call_operand.hbm [shape: f32[2,2], index: 2, kind: output, shape index: {}]  }
   0x1   :  { %v13_v0 = vld [vmem:[%s405_s0 + $0x8] sm:$0xff]  ;;  %v12_v1 = vld [vmem:[%s405_s0] sm:$0xff]  ;;  %v42_v2 = vld [vmem:[%s406_s1 + $0x18] sm:$0xff]  ;;  %325 = vset.pattern.permute.xlu1 %v349_v3  ;;  %323 = vset.pattern.permute.xlu0 %v349_v3 }
   0x2   :  { %7 = vsyncpa [#allocation3], 0  ;;  %23 = vperm.xlu1 %325, %v13_v0   ;;  %20 = vperm.xlu0 %323, %v12_v1   ;;  %v41_v4 = vld [vmem:[%s406_s1 + $0x10] sm:$0xff]  ;;  %v18_v5 = vadd.s32 16, %v13_v0  ;;  %v17_v6 = vadd.s32 16, %v12_v1  ;;  %v350_v7 = vmov 0.0   ;;  %v14_v11 = vlaneseq }
   0x3   :  { %300 = vmatprep.subr.mxu0 %v42_v2  ;;  %311 = vmatprep.subr.mxu1 %v350_v7  ;;  %v351_v8 = vmov 1   ;;  %v40_v9 = vld [vmem:[%s406_s1 + $0x8] sm:$0xff]  ;;  %v39_v10 = vld [vmem:[%s406_s1] sm:$0xff]  ;;  %vm79_vm1 = vcmask 261120   ;;  %v181_v21 = vld [vmem:[%s406_s1 + $0x30] sm:$0x1] }
   0x4   :  { %301 = vmatpush3.msra.mxu0 %v42_v2  ;;  %v15_v12 = vand.u32 127, %v14_v11  ;;  %vm193_vm4 = vcmask 1040384   ;;  %v180_v22 = vld [vmem:[%s406_s1 + $0x28] sm:$0xff]  ;;  %vm352_vm5 = vmmov 0   ;;  %v45_v23 = vshrl.u32 %v14_v11, 7  ;;  %s353_s28 = smov [#allocation2]  }
   0x5   :  { %302 = vmatprep.subr.mxu0 %v41_v4  ;;  %312 = vmatpush3.msk.msra.mxu1 %vm193_vm4, %v181_v21  ;;  %v285_v27 = vld [vmem:[%s406_s1 + $0x20] ss:$0 sm:$0xff]  ;;  %vm165_vm8 = vcmask 72704   ;;  %vm189_vm9 = vcmask 1041409   ;;  %v288_v53 = vld [vmem:[%s406_s1 + $0x38] ss:$0 sm:$0xff] }
   0x6   :  { %326 = vset.pattern.permute.xlu1 %v351_v8  ;;  %324 = vset.pattern.permute.xlu0 %v351_v8  ;;  %vm16_vm0 = vcmp.lt.s32.totalorder %v15_v12, 16  ;;  %v46_v24 = vadd.s32 8, %v45_v23  ;;  %v51_v26 = vand.u32 7, %v45_v23  ;;  %s275_s29 = sshll.u32 %s353_s28, 4  ;;  %vm267_vm10 = vcmask 9216   ;;  %s276_s29 = int_to_ptr.vmem [resolvable:$true] %s275_s29 }
   0x7   :  { %29 = vperm.xlu1 %326, %v18_v5   ;;  %26 = vperm.xlu0 %324, %v17_v6   ;;  %s327_s30 = scalar_lea.vmem %s276_s29, 32  ;;  %p332_p1 = scmp.lt.s32.totalorder %s276_s29, %s276_s29 }
   0x8   :  { %303 = vmatpush3.msra.mxu0 %v41_v4  ;;  %315 = vmatprep.mubr.msk.f32.mxu1 %vm352_vm5, %v350_v7  ;;  %v58_v25 = vand.u32 7, %v46_v24  ;;  %vm71_vm7 = vcmp.eq.s32.totalorder %v51_v26, 7  ;;  %p328_p0 = scmp.ne.s32.totalorder %s276_s29, %s327_s30  ;;  %p333_p2 = scmp.lt.s32.totalorder %s327_s30, %s327_s30 }
   0x9   :  { %304 = vmatprep.subr.mxu0 %v40_v9  ;;  %313 = vmatprep.subr.mxu1 %v350_v7  ;;  %v73_v31 = vsel %vm71_vm7, -1e+30, %v350_v7 }
   0xa   :  { %305 = vmatpush3.msra.mxu0 %v40_v9  ;;  %314 = vmatpush3.msra.mxu1 %v180_v22  ;;  %vm72_vm6 = vcmp.eq.s32.totalorder %v58_v25, 7  ;;  %p334_p3 = por %p333_p2, %p332_p1 }
   0xb   :  { %306 = vmatprep.subr.mxu0 %v39_v10  ;;  %v74_v28 = vsel %vm72_vm6, -1e+30, %v350_v7 }
   0xc   :  { %307 = vmatpush3.msra.mxu0 %v39_v10  ;;  %p335_p4 = pnand %p334_p3, %p328_p0 }
  0x7d   :  { %v21_v13 = vpop.permute.xlu0 %20  ;;  %v24_v14 = vpop.permute.xlu1 %23 }
  0x82   :  { %v30_v15 = vpop.permute.xlu1 %29  ;;  %v27_v16 = vpop.permute.xlu0 %26 }
  0x83   :  { %v32_v17 = vsel %vm16_vm0, %v24_v14, %v30_v15  ;;  %v31_v18 = vsel %vm16_vm0, %v21_v13, %v27_v16 }
  0x84   :  { %vm34_vm2 = vcmp.eq.s32.totalorder %v15_v12, %v32_v17  ;;  %vm33_vm3 = vcmp.eq.s32.totalorder %v15_v12, %v31_v18 }
  0x85   :  { %v283_v19 = vsel %vm33_vm3, 1.0, %v350_v7  ;;  %v284_v20 = vsel %vm34_vm2, 1.0, %v350_v7 }
  0x86   :  { %308 = vmatprep.mubr.msk.f32.mxu0 %vm79_vm1, %v283_v19 }
  0x87   :  { %309 = vmatmul.mubr.msk.f32.vlgmr.msra.gmra.mxu0 %vm79_vm1, %v284_v20 }
 0x147   :  { %v310_v29 = vpop.f32.mrf.mxu0 }
 0x148   :  { %v158_v30 = vadd.f32 %v310_v29, %v285_v27 }
 0x149   :  { %v152_v32 = vpop.f32.mrf.mxu0 }
 0x14a   :  { %v162_v33 = vadd.f32 %v158_v30, %v74_v28  ;;  %v153_v34 = vadd.f32 %v285_v27, %v152_v32 }
 0x14c   :  { %v164_v35 = vmax.f32 %v162_v33, 0.0  ;;  %v161_v36 = vadd.f32 %v153_v34, %v73_v31 }
 0x14e   :  { %v163_v37 = vmax.f32 %v161_v36, 0.0  ;;  %v173_v38 = vsel %vm165_vm8, %v164_v35, -inf }
 0x14f   :  { %v174_v39 = vrot.slane %v173_v38, 4 }
 0x150   :  { %v166_v40 = vsel %vm165_vm8, %v163_v37, -inf }
 0x151   :  { %v167_v41 = vrot.slane %v166_v40, 4  ;;  %v175_v42 = vmax.f32 %v173_v38, %v174_v39 }
 0x153   :  { %v168_v43 = vmax.f32 %v166_v40, %v167_v41  ;;  %v176_v44 = vrot.slane %v175_v42, 2 }
 0x155   :  { %v169_v45 = vrot.slane %v168_v43, 2  ;;  %v177_v46 = vmax.f32 %v175_v42, %v176_v44 }
 0x157   :  { %v170_v47 = vmax.f32 %v168_v43, %v169_v45  ;;  %v178_v48 = vrot.slane %v177_v46, 1 }
 0x159   :  { %v171_v49 = vrot.slane %v170_v47, 1  ;;  %v179_v51 = vmax.f32 %v177_v46, %v178_v48 }
 0x15b   :  { %v172_v50 = vmax.f32 %v170_v47, %v171_v49 }
 0x15d   :  { %v190_v52 = vsel %vm189_vm9, %v179_v51, %v172_v50 }
 0x15e   :  { %316 = vmatmul.mubr.msk.f32.vlgmr.msra.gmra.mxu1 %vm165_vm8, %v190_v52 }
 0x21e   :  { %v263_v54 = vpop.f32.mrf.mxu1 }
 0x21f   :  { %v264_v55 = vadd.f32 %v288_v53, %v263_v54 }
 0x220   :  { %v317_v56 = vpop.f32.mrf.mxu1 }
 0x221   :  { %268 = vst.msk [vmem:[#allocation2] sm:$0x3] %vm267_vm10, %v264_v55 }
 0x222   :  { %338 = shalt.err (!%p335_p4)
}
 0x223   :  { %278 = dma.vmem_to_hbm [thread:$0]  %s276_s29, 32, %s407_s2, [#allocation3]  }
 0x224   :  { %347 = dma.done.wait [#allocation3], 32  }
 0x225   :  { %348 = vsyncadd [#allocation3], 4294967264 }
 0x226   :  { %282 = vsyncpa [#allocation3], 1 }

</bundles_post_ra>
